<compile_context>
chip_gen: v7x
topology: tpu7x:2x2x1
jax: 0.10.0
libtpu: 0.0.40
codegen_flags: <defaults>
</compile_context>

<pallas_src>
import functools

import jax
import jax.numpy as jnp
import numpy as np
from jax.experimental import pallas as pl
from jax.experimental.pallas import tpu as pltpu

_SUBLANES = {4: 8, 2: 16, 1: 32}          # sublane multiple per itemsize
_VMEM_SOFT_CAP = 40 * 1024 * 1024         # keep working set v7x-friendly


def _round_up(x, m):
    return ((x + m - 1) // m) * m


def _ceil_div_int(a, b):
    return -(-a // b)


def _same_pool_geometry(in_len, kernel_size):
    """Mirrors the PyTorch module: SAME padding computed with stride=1, then
    nn.MaxPool1d(kernel_size) whose stride defaults to kernel_size."""
    stride = 1
    out_dim_same = (in_len + stride - 1) // stride
    p = max(0, (out_dim_same - 1) * stride + kernel_size - in_len)
    pad_left = p // 2
    pad_right = p - pad_left
    l_out = (in_len + p - kernel_size) // kernel_size + 1
    return pad_left, pad_right, l_out


def _select_tiles(nc, l_out, kernel_size, itemsize, sub, tile_nc, tile_l):
    """Pick lane/sublane-aligned block sizes, balance them across the grid,
    expose >=2 blocks for v7x megacore when possible, and bound VMEM use."""
    k = kernel_size
    tile_nc = max(sub, min(_round_up(tile_nc, sub), _round_up(nc, sub)))
    tile_l = max(128, min(_round_up(tile_l, 128), _round_up(l_out, 128)))
    # Balance block sizes instead of e.g. a (256, 1) split for nc = 257.
    tile_nc = min(tile_nc, _round_up(pl.cdiv(nc, pl.cdiv(nc, tile_nc)), sub))
    tile_l = min(tile_l, _round_up(pl.cdiv(l_out, pl.cdiv(l_out, tile_l)), 128))
    # v7x has 2 TensorCores: make sure a parallel axis has >=2 blocks if it can.
    if pl.cdiv(nc, tile_nc) * pl.cdiv(l_out, tile_l) == 1:
        if l_out > 128:
            tile_l = _round_up(pl.cdiv(l_out, 2), 128)
        elif nc > sub:
            tile_nc = _round_up(pl.cdiv(nc, 2), sub)

    def footprint(tnc, tl):  # double-buffered input (+halo) and output blocks
        return 2 * tnc * ((k + 1) * tl + 128) * itemsize

    while footprint(tile_nc, tile_l) > _VMEM_SOFT_CAP and tile_l > 128:
        tile_l = _round_up(tile_l // 2, 128)
    while footprint(tile_nc, tile_l) > _VMEM_SOFT_CAP and tile_nc > sub:
        tile_nc = _round_up(tile_nc // 2, sub)

    vmem_bytes = int(min(48 * 1024 * 1024,
                         max(16 * 1024 * 1024,
                             footprint(tile_nc, tile_l) + 4 * 1024 * 1024)))
    return tile_nc, tile_l, vmem_bytes


# --------------------------------------------------------------------------- #
# Fused kernel: reads the raw input, does padding / tap extraction in-kernel.  #
# --------------------------------------------------------------------------- #
def _fused_pool_kernel(x_ref, halo_ref, o_ref, *, kernel_size, pad_left, in_len,
                       tile_nc, tile_l):
    k = kernel_size
    j = pl.program_id(1)
    base = j * tile_l  # first output window handled by this block
    r = jax.lax.broadcasted_iota(jnp.int32, (tile_nc, tile_l), 1)

    def masked_tap(start, d, row_shift):
        # Lane-strided read: one value per output window for tap offset d.
        v = x_ref[:, pl.ds(start, tile_l, stride=k)]
        # Taps whose source column is >= in_len are right SAME-padding (or
        # garbage from the partial edge block): replace with 0, matching the
        # PyTorch module where constant-0 padding participates in the max.
        thr = (_ceil_div_int(in_len - d, k) - row_shift) - base
        return jnp.where(r < thr, v, 0)

    # Taps m >= pad_left are aligned with this block's windows.
    acc = masked_tap(0, 0, 0)
    for m in range(pad_left + 1, k):
        acc = jnp.maximum(acc, masked_tap(m - pad_left, m - pad_left, 0))

    if pad_left > 0:
        # Taps m < pad_left belong to one window earlier: read them shifted by
        # one window, max them (pure VPU), then rotate into place (XLU roll).
        d0 = -pad_left
        accb = masked_tap(k + d0, d0, 1)
        for m in range(1, pad_left):
            d = m - pad_left
            accb = jnp.maximum(accb, masked_tap(k + d, d, 1))
        accb = pltpu.roll(accb, shift=1, axis=1)
        # Window 0 of this block takes those taps from the previous input
        # block's last `pad_left` columns (halo), or from the SAME left-pad
        # zeros when this is the very first block.
        halo_tail = halo_ref[:, pl.ds(128 - pad_left, pad_left)]
        first = jnp.max(halo_tail, axis=1, keepdims=True)
        first = jnp.where(j == 0, 0, first)
        accb = jnp.where(r == 0, first, accb)
        acc = jnp.maximum(acc, accb)

    o_ref[...] = acc


@functools.partial(jax.jit, static_argnames=("kernel_size",))
def _pool_fused(x, *, kernel_size):
    k = kernel_size
    n, c, in_len = x.shape
    pad_left, _pad_right, l_out = _same_pool_geometry(in_len, k)
    nc = n * c
    itemsize = jnp.dtype(x.dtype).itemsize
    sub = _SUBLANES.get(itemsize, 8)
    tile_nc, tile_l, vmem_bytes = _select_tiles(nc, l_out, k, itemsize, sub, 256, 1024)

    blk_w = tile_l * k              # input columns consumed per output block
    halo_ratio = blk_w // 128       # 128-col halo blocks per main block
    x2 = x.reshape(nc, in_len)      # free (dim-merge) reshape

    kernel = functools.partial(_fused_pool_kernel, kernel_size=k, pad_left=pad_left,
                               in_len=in_len, tile_nc=tile_nc, tile_l=tile_l)
    out = pl.pallas_call(
        kernel,
        out_shape=jax.ShapeDtypeStruct((nc, l_out), x.dtype),
        grid=(pl.cdiv(nc, tile_nc), pl.cdiv(l_out, tile_l)),
        in_specs=[
            # Main input block feeding this block's windows (partial at edges).
            pl.BlockSpec((tile_nc, blk_w), lambda i, j: (i, j)),
            # 128-column halo ending where the main block starts (left-neighbor
            # data for the first window; unused / zero-substituted when j == 0).
            pl.BlockSpec((tile_nc, 128),
                         lambda i, j: (i, jnp.maximum(j * halo_ratio - 1, 0))),
        ],
        out_specs=pl.BlockSpec((tile_nc, tile_l), lambda i, j: (i, j)),
        compiler_params=pltpu.CompilerParams(
            dimension_semantics=("parallel", "parallel"),
            vmem_limit_bytes=vmem_bytes,
        ),
    )(x2, x2)
    return out.reshape(n, c, l_out)


# --------------------------------------------------------------------------- #
# Robust fallback: phase-major slab built by XLA, leading-axis max kernel.     #
# --------------------------------------------------------------------------- #
def _phase_major_kernel(w_ref, o_ref, *, kernel_size):
    acc = w_ref[0]
    for m in range(1, kernel_size):
        acc = jnp.maximum(acc, w_ref[m])
    o_ref[...] = acc


@functools.partial(jax.jit, static_argnames=("kernel_size",))
def _pool_phase_major(x, *, kernel_size):
    k = kernel_size
    n, c, in_len = x.shape
    pad_left, pad_right, l_out = _same_pool_geometry(in_len, k)
    nc = n * c
    itemsize = jnp.dtype(x.dtype).itemsize
    sub = _SUBLANES.get(itemsize, 8)
    tile_nc, tile_l, vmem_bytes = _select_tiles(nc, l_out, k, itemsize, sub, 256, 1024)
    nc_p = _round_up(nc, tile_nc)
    lo_p = _round_up(l_out, tile_l)

    xp = jnp.pad(x.reshape(nc, in_len), ((0, 0), (pad_left, pad_right)))  # zeros
    win = jnp.moveaxis(xp[:, :l_out * k].reshape(nc, l_out, k), -1, 0)
    win = jnp.pad(win, ((0, 0), (0, nc_p - nc), (0, lo_p - l_out)))

    out = pl.pallas_call(
        functools.partial(_phase_major_kernel, kernel_size=k),
        out_shape=jax.ShapeDtypeStruct((nc_p, lo_p), x.dtype),
        grid=(nc_p // tile_nc, lo_p // tile_l),
        in_specs=[pl.BlockSpec((k, tile_nc, tile_l), lambda i, j: (0, i, j))],
        out_specs=pl.BlockSpec((tile_nc, tile_l), lambda i, j: (i, j)),
        compiler_params=pltpu.CompilerParams(
            dimension_semantics=("parallel", "parallel"),
            vmem_limit_bytes=vmem_bytes,
        ),
    )(win)
    return out[:nc, :l_out].reshape(n, c, l_out)


def _reference(x, kernel_size):
    """Pure-numpy reference mirroring the PyTorch module."""
    x = np.asarray(x)
    k = kernel_size
    n, c, in_len = x.shape
    pad_left, pad_right, l_out = _same_pool_geometry(in_len, k)
    xp = np.pad(x, ((0, 0), (0, 0), (pad_left, pad_right)), constant_values=0)
    out = np.empty((n, c, l_out), dtype=x.dtype)
    for i in range(l_out):
        out[:, :, i] = xp[:, :, i * k:i * k + k].max(-1)
    return out


@functools.cache
def _fused_path_ok():
    """One-time self-test of the fused kernel's exotic pieces (lane-strided ref
    reads, pltpu.roll, partial blocks, halo indexing) on tiny inputs.  If any of
    it fails to lower or miscomputes on this toolchain, use the fallback."""
    try:
        for seed, k, shape in ((0, 3, (1, 2, 700)),   # roll + multi-block halo
                               (1, 4, (1, 5, 21)),    # asymmetric pad, partial blocks
                               (2, 2, (1, 4, 19))):   # pad_left == 0 path
            x = jax.random.normal(jax.random.PRNGKey(100 + seed), shape, jnp.float32)
            got = np.asarray(jax.block_until_ready(_pool_fused(x, kernel_size=k)))
            if not np.array_equal(got, _reference(np.asarray(x), k)):
                return False
        return True
    except Exception:
        return False


def my_max_pool1d_pad_same(x, kernel_size):
    """Forward pass of MyMaxPool1dPadSame for x of shape (N, C, L)."""
    kernel_size = int(kernel_size)
    pad_left, _, _ = _same_pool_geometry(x.shape[-1], kernel_size)
    if pad_left <= 127 and _fused_path_ok():
        try:
            return _pool_fused(x, kernel_size=kernel_size)
        except Exception:  # extra safety net; fall through to the robust path
            pass
    return _pool_phase_major(x, kernel_size=kernel_size)


if __name__ == "__main__":
    key = jax.random.PRNGKey(0)

    # Primary small test (module-consistent shapes).
    batch, channels, length = 2, 4, 16
    kernel_size = 3  # module hyper-parameter (no learnable weights)
    x = jax.random.normal(key, (batch, channels, length), dtype=jnp.float32)
    out = jax.block_until_ready(my_max_pool1d_pad_same(x, kernel_size))
    ref = _reference(np.asarray(x), kernel_size)
    assert out.shape == ref.shape, (out.shape, ref.shape)
    np.testing.assert_allclose(np.asarray(out), ref, rtol=0, atol=0)

    # Edge padding with negative inputs, length not a multiple of kernel size.
    x2 = jax.random.normal(jax.random.PRNGKey(1), (2, 8, 300), dtype=jnp.float32)
    out2 = jax.block_until_ready(my_max_pool1d_pad_same(x2, 4))
    ref2 = _reference(np.asarray(x2), 4)
    assert out2.shape == ref2.shape, (out2.shape, ref2.shape)
    np.testing.assert_allclose(np.asarray(out2), ref2, rtol=0, atol=0)

    # Larger sequence: multiple output-column blocks (exercises the halo path).
    x3 = jax.random.normal(jax.random.PRNGKey(2), (2, 4, 1537), dtype=jnp.float32)
    out3 = jax.block_until_ready(my_max_pool1d_pad_same(x3, 3))
    ref3 = _reference(np.asarray(x3), 3)
    assert out3.shape == ref3.shape, (out3.shape, ref3.shape)
    np.testing.assert_allclose(np.asarray(out3), ref3, rtol=0, atol=0)

    print("KERNEL_OK")
</pallas_src>

<mosaic_0001>
module attributes {stable_mosaic.version = 11 : i64} {
  func.func @_fused_pool_kernel(%arg0: i32, %arg1: i32, %arg2: memref<8x384xf32, #tpu.memory_space<vmem>>, %arg3: memref<8x128xf32, #tpu.memory_space<vmem>>, %arg4: memref<8x128xf32, #tpu.memory_space<vmem>>) attributes {dimension_semantics = [#tpu.dimension_semantics<parallel>, #tpu.dimension_semantics<parallel>], iteration_bounds = array<i64: 1, 2>, scalar_prefetch = 0 : i64, scratch_operands = 0 : i64, tpu.core_type = #tpu.core_type<tc>, window_params = [{transform_indices = @transform_0, window_bounds = array<i64: 8, 384>}, {transform_indices = @transform_1, window_bounds = array<i64: 8, 128>}, {transform_indices = @transform_2, window_bounds = array<i64: 8, 128>}]} {
    %c128_i32 = arith.constant 128 : i32
    %0 = arith.muli %arg1, %c128_i32 : i32
    %1 = tpu.iota {dimensions = array<i32: 1>} : vector<8x128xi32>
    %c0 = arith.constant 0 : index
    %c0_0 = arith.constant 0 : index
    %2 = tpu.strided_load %arg2[%c0, %c0_0] {strides = array<i32: 1, 3>} : memref<8x384xf32, #tpu.memory_space<vmem>>, vector<8x128xf32>
    %c234_i32 = arith.constant 234 : i32
    %3 = arith.subi %c234_i32, %0 : i32
    %4 = vector.broadcast %3 : i32 to vector<8x128xi32>
    %5 = arith.cmpi slt, %1, %4 : vector<8x128xi32>
    %c0_i32 = arith.constant 0 : i32
    %6 = arith.sitofp %c0_i32 : i32 to f32
    %7 = vector.broadcast %6 : f32 to vector<8x128xf32>
    %8 = arith.select %5, %2, %7 : vector<8x128xi1>, vector<8x128xf32>
    %c0_1 = arith.constant 0 : index
    %c1 = arith.constant 1 : index
    %9 = tpu.strided_load %arg2[%c0_1, %c1] {strides = array<i32: 1, 3>} : memref<8x384xf32, #tpu.memory_space<vmem>>, vector<8x128xf32>
    %c233_i32 = arith.constant 233 : i32
    %10 = arith.subi %c233_i32, %0 : i32
    %11 = vector.broadcast %10 : i32 to vector<8x128xi32>
    %12 = arith.cmpi slt, %1, %11 : vector<8x128xi32>
    %c0_i32_2 = arith.constant 0 : i32
    %13 = arith.sitofp %c0_i32_2 : i32 to f32
    %14 = vector.broadcast %13 : f32 to vector<8x128xf32>
    %15 = arith.select %12, %9, %14 : vector<8x128xi1>, vector<8x128xf32>
    %16 = arith.maximumf %8, %15 : vector<8x128xf32>
    %c0_3 = arith.constant 0 : index
    %c2 = arith.constant 2 : index
    %17 = tpu.strided_load %arg2[%c0_3, %c2] {strides = array<i32: 1, 3>} : memref<8x384xf32, #tpu.memory_space<vmem>>, vector<8x128xf32>
    %c233_i32_4 = arith.constant 233 : i32
    %18 = arith.subi %c233_i32_4, %0 : i32
    %19 = vector.broadcast %18 : i32 to vector<8x128xi32>
    %20 = arith.cmpi slt, %1, %19 : vector<8x128xi32>
    %c0_i32_5 = arith.constant 0 : i32
    %21 = arith.sitofp %c0_i32_5 : i32 to f32
    %22 = vector.broadcast %21 : f32 to vector<8x128xf32>
    %23 = arith.select %20, %17, %22 : vector<8x128xi1>, vector<8x128xf32>
    %c1_i32 = arith.constant 1 : i32
    %24 = tpu.dynamic_rotate %23 by %c1_i32 dim 1 : vector<8x128xf32>, i32 -> vector<8x128xf32>
    %c0_6 = arith.constant 0 : index
    %c127 = arith.constant 127 : index
    %25 = vector.load %arg3[%c0_6, %c127] : memref<8x128xf32, #tpu.memory_space<vmem>>, vector<8x1xf32>
    %cst = arith.constant dense<0xFF800000> : vector<8xf32>
    %26 = vector.multi_reduction <maximumf>, %25, %cst [1] : vector<8x1xf32> to vector<8xf32>
    %27 = vector.shape_cast %26 : vector<8xf32> to vector<8x1xf32>
    %c0_i32_7 = arith.constant 0 : i32
    %28 = arith.cmpi eq, %arg1, %c0_i32_7 : i32
    %c0_i32_8 = arith.constant 0 : i32
    %29 = arith.sitofp %c0_i32_8 : i32 to f32
    %30 = vector.broadcast %29 : f32 to vector<8x1xf32>
    %31 = arith.select %28, %30, %27 : vector<8x1xf32>
    %c0_i32_9 = arith.constant 0 : i32
    %32 = vector.broadcast %c0_i32_9 : i32 to vector<8x128xi32>
    %33 = arith.cmpi eq, %1, %32 : vector<8x128xi32>
    %34 = vector.shape_cast %31 : vector<8x1xf32> to vector<8x1xf32>
    %35 = vector.broadcast %34 : vector<8x1xf32> to vector<8x128xf32>
    %36 = arith.select %33, %35, %24 : vector<8x128xi1>, vector<8x128xf32>
    %37 = arith.maximumf %16, %36 : vector<8x128xf32>
    %c0_10 = arith.constant 0 : index
    %c0_11 = arith.constant 0 : index
    %38 = vector.load %arg4[%c0_10, %c0_11] : memref<8x128xf32, #tpu.memory_space<vmem>>, vector<8x128xf32>
    tpu.vector_store %arg4[%c0_10, %c0_11], %37 {strides = array<i32>} : memref<8x128xf32, #tpu.memory_space<vmem>>, vector<8x128xf32>,
    return
  }
  func.func @transform_0(%arg0: i32, %arg1: i32) -> (i32, i32) {
    %c0_i32 = arith.constant 0 : i32
    return %arg0, %arg1 : i32, i32
  }
  func.func @transform_1(%arg0: i32, %arg1: i32) -> (i32, i32) {
    %c3_i32 = arith.constant 3 : i32
    %0 = arith.muli %arg1, %c3_i32 : i32
    %c1_i32 = arith.constant 1 : i32
    %1 = arith.subi %0, %c1_i32 : i32
    %c0_i32 = arith.constant 0 : i32
    %2 = arith.maxsi %1, %c0_i32 : i32
    %c0_i32_0 = arith.constant 0 : i32
    return %arg0, %2 : i32, i32
  }
  func.func @transform_2(%arg0: i32, %arg1: i32) -> (i32, i32) {
    %c0_i32 = arith.constant 0 : i32
    return %arg0, %arg1 : i32, i32
  }
}

module attributes {stable_mosaic.version = 11 : i64} {
  func.func @_phase_major_kernel(%arg0: i32, %arg1: i32, %arg2: memref<3x8x128xf32, #tpu.memory_space<vmem>>, %arg3: memref<8x128xf32, #tpu.memory_space<vmem>>) attributes {dimension_semantics = [#tpu.dimension_semantics<parallel>, #tpu.dimension_semantics<parallel>], iteration_bounds = array<i64: 1, 1>, scalar_prefetch = 0 : i64, scratch_operands = 0 : i64, tpu.core_type = #tpu.core_type<tc>, window_params = [{transform_indices = @transform_0, window_bounds = array<i64: 3, 8, 128>}, {transform_indices = @transform_1, window_bounds = array<i64: 8, 128>}]} {
    %c0 = arith.constant 0 : index
    %c0_0 = arith.constant 0 : index
    %c0_1 = arith.constant 0 : index
    %0 = vector.load %arg2[%c0, %c0_0, %c0_1] : memref<3x8x128xf32, #tpu.memory_space<vmem>>, vector<1x8x128xf32>
    %1 = vector.shape_cast %0 : vector<1x8x128xf32> to vector<8x128xf32>
    %c1 = arith.constant 1 : index
    %c0_2 = arith.constant 0 : index
    %c0_3 = arith.constant 0 : index
    %2 = vector.load %arg2[%c1, %c0_2, %c0_3] : memref<3x8x128xf32, #tpu.memory_space<vmem>>, vector<1x8x128xf32>
    %3 = vector.shape_cast %2 : vector<1x8x128xf32> to vector<8x128xf32>
    %4 = arith.maximumf %1, %3 : vector<8x128xf32>
    %c2 = arith.constant 2 : index
    %c0_4 = arith.constant 0 : index
    %c0_5 = arith.constant 0 : index
    %5 = vector.load %arg2[%c2, %c0_4, %c0_5] : memref<3x8x128xf32, #tpu.memory_space<vmem>>, vector<1x8x128xf32>
    %6 = vector.shape_cast %5 : vector<1x8x128xf32> to vector<8x128xf32>
    %7 = arith.maximumf %4, %6 : vector<8x128xf32>
    %c0_6 = arith.constant 0 : index
    %c0_7 = arith.constant 0 : index
    %8 = vector.load %arg3[%c0_6, %c0_7] : memref<8x128xf32, #tpu.memory_space<vmem>>, vector<8x128xf32>
    tpu.vector_store %arg3[%c0_6, %c0_7], %7 {strides = array<i32>} : memref<8x128xf32, #tpu.memory_space<vmem>>, vector<8x128xf32>,
    return
  }
  func.func @transform_0(%arg0: i32, %arg1: i32) -> (i32, i32, i32) {
    %c0_i32 = arith.constant 0 : i32
    %c0_i32_0 = arith.constant 0 : i32
    return %c0_i32, %arg0, %arg1 : i32, i32, i32
  }
  func.func @transform_1(%arg0: i32, %arg1: i32) -> (i32, i32) {
    %c0_i32 = arith.constant 0 : i32
    return %arg0, %arg1 : i32, i32
  }
}

</mosaic_0001>

<bundles_post_ra>
// kernel: _pool_phase_major.1
= control target key start
LH: loop header
LB: loop body
LE: loop exit
PB: predicated region body
PF: predicated region fallthrough
CT: control target
= control target key end

     0   :  { %s90_s0 = inlined_call_operand.vmem [shape: f32[3,8,128], index: 0, kind: input, shape index: {}]   ;;  %s91_s1 = inlined_call_operand.hbm [shape: f32[8,128], index: 1, kind: output, shape index: {}]  }
   0x1   :  { %v9_v0 = vld [vmem:[%s90_s0] sm:$0xff]  ;;  %v31_v1 = vld [vmem:[%s90_s0 + $0x8] sm:$0xff]  ;;  %v32_v2 = vld [vmem:[%s90_s0 + $0x10] sm:$0xff] }
   0x2   :  { %v12_v3 = vmax.f32 %v9_v0, %v31_v1 }
   0x3   :  { %6 = vsyncpa [#allocation3], 0  ;;  %s58_s12 = smov [#allocation2]  }
   0x4   :  { %s23_s13 = sshll.u32 %s58_s12, 4  ;;  %v15_v4 = vmax.f32 %v12_v3, %v32_v2  ;;  %s24_s13 = int_to_ptr.vmem [resolvable:$true] %s23_s13 }
   0x5   :  { %s34_s14 = scalar_lea.vmem %s24_s13, 128  ;;  %p39_p1 = scmp.lt.s32.totalorder %s24_s13, %s24_s13 }
   0x6   :  { %16 = vst [vmem:[#allocation2] sm:$0xff] %v15_v4  ;;  %p35_p0 = scmp.ne.s32.totalorder %s24_s13, %s34_s14  ;;  %p40_p2 = scmp.lt.s32.totalorder %s34_s14, %s34_s14 }
   0x8   :  { %p41_p3 = por %p40_p2, %p39_p1 }
   0xa   :  { %p42_p4 = pnand %p41_p3, %p35_p0 }
   0xc   :  { %45 = shalt.err (!%p42_p4)
}
   0xd   :  { %s46_s17 = scalar_lea.hbm %s91_s1, 128 }
   0xe   :  { %p47_p5 = scmp.ne.s32.totalorder %s91_s1, %s46_s17  ;;  %p50_p6 = scmp.lt.u32.totalorder %s46_s17, %s91_s1 }
  0x10   :  { %p52_p7 = pnand %p50_p6, %p47_p5 }
  0x12   :  { %55 = shalt.err (!%p52_p7)
}
  0x13   :  { %26 = dma.vmem_to_hbm [thread:$0]  %s24_s13, 128, %s91_s1, [#allocation3]  }
  0x14   :  { %56 = dma.done.wait [#allocation3], 128  }
  0x15   :  { %57 = vsyncadd [#allocation3], 4294967168 }
  0x16   :  { %30 = vsyncpa [#allocation3], 1 }

</bundles_post_ra>
